<compile_context>
chip_gen: v7x
topology: tpu7x:2x2x1
jax: 0.10.0
libtpu: 0.0.40
codegen_flags: <defaults>
</compile_context>

<pallas_src>
import jax
import jax.numpy as jnp
import numpy as np
from jax.experimental import pallas as pl
from jax.experimental.pallas import tpu as pltpu

LANE = 128


def encoder_rnn_kernel(tok_ref, emb_row_ref, w_ref, b_ref, h0_ref, out_ref, h_scratch):
    # tok_ref:     SMEM int32[T]   (scalar prefetch; only consumed by the index_maps)
    # emb_row_ref: (1, 1, Hp)      gathered embedding row for this step
    # w_ref:       (2*Hp, Hp)      stacked [W_ih^T; W_hh^T]   (resident in VMEM)
    # b_ref:       (1, Hp)         b_ih + b_hh                (resident in VMEM)
    # h0_ref:      (1, Hp)         initial hidden
    # out_ref:     (1, 1, Hp)      per-step output (== new hidden)
    # h_scratch:   (1, Hp)         carried hidden state across grid steps
    del tok_ref
    t = pl.program_id(0)

    @pl.when(t == 0)
    def _():
        h_scratch[...] = h0_ref[...]

    x = emb_row_ref[0]                       # (1, Hp)
    h = h_scratch[...]                       # (1, Hp)
    xh = jnp.concatenate([x, h], axis=1)     # (1, 2*Hp) -> single fused MXU matmul
    h_new = jnp.tanh(
        jnp.dot(xh, w_ref[...], preferred_element_type=jnp.float32) + b_ref[...])
    h_scratch[...] = h_new
    out_ref[0] = h_new.astype(out_ref.dtype)


def _pad_to(x, shape):
    return jnp.pad(x, [(0, s - d) for d, s in zip(x.shape, shape)])


def prepare_encoder_params(raw_params, lane=LANE):
    """One-time prep: transpose + stack weights, combine biases, pad H -> Hp."""
    emb, w_ih, w_hh, b_ih, b_hh = raw_params
    V, H = emb.shape
    Hp = max(lane, ((H + lane - 1) // lane) * lane)

    emb_p = _pad_to(emb, (V, Hp)).reshape(V, 1, Hp)            # (V, 1, Hp)
    w_ihT = _pad_to(jnp.transpose(w_ih), (Hp, Hp))
    w_hhT = _pad_to(jnp.transpose(w_hh), (Hp, Hp))
    w = jnp.concatenate([w_ihT, w_hhT], axis=0)                # (2*Hp, Hp)
    b = _pad_to((b_ih + b_hh).reshape(1, H), (1, Hp))          # (1, Hp)
    return emb_p, w, b, H, Hp


def encoder_rnn_forward(tokens, hidden, prepared):
    """tokens: int32[T]; hidden: f32[1,1,H].

    Returns (outputs f32[T,1,H], hidden f32[1,1,H]).  T=1 matches the PyTorch
    module's forward(input, hidden) exactly; T>1 runs the whole sequence in one
    kernel launch with the hidden state kept on-chip.
    """
    emb_p, w, b, H, Hp = prepared
    T = int(tokens.shape[0])
    h0 = _pad_to(hidden.reshape(1, H), (1, Hp))

    out = pl.pallas_call(
        encoder_rnn_kernel,
        out_shape=jax.ShapeDtypeStruct((T, 1, Hp), jnp.float32),
        grid_spec=pltpu.PrefetchScalarGridSpec(
            num_scalar_prefetch=1,
            grid=(T,),
            in_specs=[
                # Per-step embedding row gather, driven by the prefetched token.
                pl.BlockSpec((1, 1, Hp), lambda t, tok: (tok[t], 0, 0)),
                # Fused weights / bias / h0: same block every step -> stay resident.
                pl.BlockSpec((2 * Hp, Hp), lambda t, tok: (0, 0)),
                pl.BlockSpec((1, Hp), lambda t, tok: (0, 0)),
                pl.BlockSpec((1, Hp), lambda t, tok: (0, 0)),
            ],
            out_specs=pl.BlockSpec((1, 1, Hp), lambda t, tok: (t, 0, 0)),
            scratch_shapes=[pltpu.VMEM((1, Hp), jnp.float32)],
        ),
        compiler_params=pltpu.CompilerParams(
            dimension_semantics=("arbitrary",)),   # recurrent axis
    )(tokens, emb_p, w, b, h0)

    outputs = out[:, :, :H]                         # (T, 1, H)
    hidden_new = outputs[-1].reshape(1, 1, H)       # final hidden
    return outputs, hidden_new


def init_params(key, input_size, hidden_size):
    k_emb, k_ih, k_hh, k_bih, k_bhh = jax.random.split(key, 5)
    bound = 1.0 / np.sqrt(hidden_size)
    emb = jax.random.normal(k_emb, (input_size, hidden_size), jnp.float32)  # nn.Embedding: N(0,1)
    w_ih = jax.random.uniform(k_ih, (hidden_size, hidden_size), jnp.float32, -bound, bound)
    w_hh = jax.random.uniform(k_hh, (hidden_size, hidden_size), jnp.float32, -bound, bound)
    b_ih = jax.random.uniform(k_bih, (hidden_size,), jnp.float32, -bound, bound)
    b_hh = jax.random.uniform(k_bhh, (hidden_size,), jnp.float32, -bound, bound)
    return emb, w_ih, w_hh, b_ih, b_hh


def reference_forward(tokens, hidden, raw_params):
    emb, w_ih, w_hh, b_ih, b_hh = raw_params
    h = hidden[0]                                    # (1, H)
    outs = []
    for t in range(tokens.shape[0]):
        x = emb[tokens[t]][None, :]                  # (1, H)
        h = jnp.tanh(x @ w_ih.T + b_ih + h @ w_hh.T + b_hh)
        outs.append(h)
    return jnp.stack(outs, axis=0), h[None]          # (T,1,H), (1,1,H)


if __name__ == "__main__":
    input_size = 16      # vocab size
    hidden_size = 32
    seq_len = 8

    key = jax.random.PRNGKey(0)
    k_params, k_tok = jax.random.split(key)
    raw_params = init_params(k_params, input_size, hidden_size)
    prepared = prepare_encoder_params(raw_params)

    tokens = jax.random.randint(k_tok, (seq_len,), 0, input_size, dtype=jnp.int32)
    hidden = jnp.zeros((1, 1, hidden_size), dtype=jnp.float32)   # initHidden()

    # Full sequence in one kernel launch.
    outputs, hidden_out = encoder_rnn_forward(tokens, hidden, prepared)
    jax.block_until_ready((outputs, hidden_out))
    ref_out, ref_hid = reference_forward(tokens, hidden, raw_params)
    np.testing.assert_allclose(np.asarray(outputs), np.asarray(ref_out), rtol=1e-5, atol=1e-5)
    np.testing.assert_allclose(np.asarray(hidden_out), np.asarray(ref_hid), rtol=1e-5, atol=1e-5)

    # Single-step call == original module forward(input, hidden).
    out1, hid1 = encoder_rnn_forward(tokens[:1], hidden, prepared)
    jax.block_until_ready((out1, hid1))
    ref_out1, ref_hid1 = reference_forward(tokens[:1], hidden, raw_params)
    np.testing.assert_allclose(np.asarray(out1), np.asarray(ref_out1), rtol=1e-5, atol=1e-5)
    np.testing.assert_allclose(np.asarray(hid1), np.asarray(ref_hid1), rtol=1e-5, atol=1e-5)

    print("KERNEL_OK")
</pallas_src>

<mosaic_0001>
module attributes {stable_mosaic.version = 11 : i64} {
  func.func @encoder_rnn_kernel(%arg0: i32, %arg1: memref<8xi32, #tpu.memory_space<smem>>, %arg2: memref<1x1x128xf32, #tpu.memory_space<vmem>>, %arg3: memref<256x128xf32, #tpu.memory_space<vmem>>, %arg4: memref<1x128xf32, #tpu.memory_space<vmem>>, %arg5: memref<1x128xf32, #tpu.memory_space<vmem>>, %arg6: memref<1x1x128xf32, #tpu.memory_space<vmem>>, %arg7: memref<1x128xf32, #tpu.memory_space<vmem>>) attributes {dimension_semantics = [#tpu.dimension_semantics<arbitrary>], iteration_bounds = array<i64: 8>, scalar_prefetch = 1 : i64, scratch_operands = 1 : i64, tpu.core_type = #tpu.core_type<tc>, window_params = [{transform_indices = @transform_0, window_bounds = array<i64: 1, 1, 128>}, {pipeline_mode = #tpu.pipeline_mode<synchronous>, transform_indices = @transform_1, window_bounds = array<i64: 256, 128>}, {pipeline_mode = #tpu.pipeline_mode<synchronous>, transform_indices = @transform_2, window_bounds = array<i64: 1, 128>}, {pipeline_mode = #tpu.pipeline_mode<synchronous>, transform_indices = @transform_3, window_bounds = array<i64: 1, 128>}, {transform_indices = @transform_4, window_bounds = array<i64: 1, 1, 128>}]} {
    %c0_i32 = arith.constant 0 : i32
    %0 = arith.cmpi eq, %arg0, %c0_i32 : i32
    %1 = arith.extui %0 : i1 to i32
    %c0_i32_0 = arith.constant 0 : i32
    %2 = arith.cmpi ne, %1, %c0_i32_0 : i32
    scf.if %2 {
      %c0_14 = arith.constant 0 : index
      %c0_15 = arith.constant 0 : index
      %16 = vector.load %arg5[%c0_14, %c0_15] : memref<1x128xf32, #tpu.memory_space<vmem>>, vector<1x128xf32>
      %c0_16 = arith.constant 0 : index
      %c0_17 = arith.constant 0 : index
      %17 = vector.load %arg7[%c0_16, %c0_17] : memref<1x128xf32, #tpu.memory_space<vmem>>, vector<1x128xf32>
      tpu.vector_store %arg7[%c0_16, %c0_17], %16 {strides = array<i32>} : memref<1x128xf32, #tpu.memory_space<vmem>>, vector<1x128xf32>,
    } else {
    }
    %c0 = arith.constant 0 : index
    %c0_1 = arith.constant 0 : index
    %c0_2 = arith.constant 0 : index
    %3 = vector.load %arg2[%c0, %c0_1, %c0_2] : memref<1x1x128xf32, #tpu.memory_space<vmem>>, vector<1x1x128xf32>
    %4 = vector.shape_cast %3 : vector<1x1x128xf32> to vector<1x128xf32>
    %c0_3 = arith.constant 0 : index
    %c0_4 = arith.constant 0 : index
    %5 = vector.load %arg7[%c0_3, %c0_4] : memref<1x128xf32, #tpu.memory_space<vmem>>, vector<1x128xf32>
    %6 = tpu.concatenate %4, %5 in 1 : vector<1x128xf32>, vector<1x128xf32> -> vector<1x256xf32>
    %c0_5 = arith.constant 0 : index
    %c0_6 = arith.constant 0 : index
    %7 = vector.load %arg3[%c0_5, %c0_6] : memref<256x128xf32, #tpu.memory_space<vmem>>, vector<256x128xf32>
    %cst = arith.constant dense<0.000000e+00> : vector<1x128xf32>
    %8 = tpu.matmul %6, %7, %cst {dimension_numbers = #tpu.dot_dimension_numbers<[1], [0], [0], [1], [0, 0, 1, 1], [], []>} : vector<1x256xf32>, vector<256x128xf32>, vector<1x128xf32> -> vector<1x128xf32>
    %c0_7 = arith.constant 0 : index
    %c0_8 = arith.constant 0 : index
    %9 = vector.load %arg4[%c0_7, %c0_8] : memref<1x128xf32, #tpu.memory_space<vmem>>, vector<1x128xf32>
    %10 = arith.addf %8, %9 : vector<1x128xf32>
    %11 = math.tanh %10 : vector<1x128xf32>
    %c0_9 = arith.constant 0 : index
    %c0_10 = arith.constant 0 : index
    %12 = vector.load %arg7[%c0_9, %c0_10] : memref<1x128xf32, #tpu.memory_space<vmem>>, vector<1x128xf32>
    tpu.vector_store %arg7[%c0_9, %c0_10], %11 {strides = array<i32>} : memref<1x128xf32, #tpu.memory_space<vmem>>, vector<1x128xf32>,
    %c0_11 = arith.constant 0 : index
    %c0_12 = arith.constant 0 : index
    %c0_13 = arith.constant 0 : index
    %13 = vector.load %arg6[%c0_11, %c0_12, %c0_13] : memref<1x1x128xf32, #tpu.memory_space<vmem>>, vector<1x1x128xf32>
    %14 = vector.shape_cast %13 : vector<1x1x128xf32> to vector<1x128xf32>
    %15 = vector.shape_cast %11 : vector<1x128xf32> to vector<1x1x128xf32>
    tpu.vector_store %arg6[%c0_11, %c0_12, %c0_13], %15 {strides = array<i32>} : memref<1x1x128xf32, #tpu.memory_space<vmem>>, vector<1x1x128xf32>,
    return
  }
  func.func @transform_0(%arg0: i32, %arg1: memref<8xi32, #tpu.memory_space<smem>>) -> (i32, i32, i32) {
    %0 = arith.index_cast %arg0 : i32 to index
    %1 = memref.load %arg1[%0] : memref<8xi32, #tpu.memory_space<smem>>
    %c0_i32 = arith.constant 0 : i32
    %c0_i32_0 = arith.constant 0 : i32
    %c0_i32_1 = arith.constant 0 : i32
    return %1, %c0_i32, %c0_i32_0 : i32, i32, i32
  }
  func.func @transform_1(%arg0: i32, %arg1: memref<8xi32, #tpu.memory_space<smem>>) -> (i32, i32) {
    %c0_i32 = arith.constant 0 : i32
    %c0_i32_0 = arith.constant 0 : i32
    %c0_i32_1 = arith.constant 0 : i32
    return %c0_i32, %c0_i32_0 : i32, i32
  }
  func.func @transform_2(%arg0: i32, %arg1: memref<8xi32, #tpu.memory_space<smem>>) -> (i32, i32) {
    %c0_i32 = arith.constant 0 : i32
    %c0_i32_0 = arith.constant 0 : i32
    %c0_i32_1 = arith.constant 0 : i32
    return %c0_i32, %c0_i32_0 : i32, i32
  }
  func.func @transform_3(%arg0: i32, %arg1: memref<8xi32, #tpu.memory_space<smem>>) -> (i32, i32) {
    %c0_i32 = arith.constant 0 : i32
    %c0_i32_0 = arith.constant 0 : i32
    %c0_i32_1 = arith.constant 0 : i32
    return %c0_i32, %c0_i32_0 : i32, i32
  }
  func.func @transform_4(%arg0: i32, %arg1: memref<8xi32, #tpu.memory_space<smem>>) -> (i32, i32, i32) {
    %c0_i32 = arith.constant 0 : i32
    %c0_i32_0 = arith.constant 0 : i32
    %c0_i32_1 = arith.constant 0 : i32
    return %arg0, %c0_i32, %c0_i32_0 : i32, i32, i32
  }
}

</mosaic_0001>

<bundles_post_ra>
// kernel: tpu_custom_call.1
= control target key start
LH: loop header
LB: loop body
LE: loop exit
PB: predicated region body
PF: predicated region fallthrough
CT: control target
= control target key end

     0   :  { %s1047_s0 = inlined_call_operand.hbm [shape: s32[8], index: 0, kind: input, shape index: {}]   ;;  %s1048_s1 = inlined_call_operand.hbm [shape: f32[16,1,128], index: 1, kind: input, shape index: {}]   ;;  %s1049_s2 = inlined_call_operand.hbm [shape: f32[256,128], index: 2, kind: input, shape index: {}]   ;;  %s1050_s3 = inlined_call_operand.vmem [shape: f32[1,128], index: 3, kind: input, shape index: {}]   ;;  %s1051_s4 = inlined_call_operand.vmem [shape: f32[1,128], index: 4, kind: input, shape index: {}]   ;;  %s1052_s5 = inlined_call_operand.hbm [shape: f32[8,1,128], index: 5, kind: output, shape index: {}]  }
   0x1   :  { %s601_s20 = scalar_lea.hbm %s1047_s0, 16 }
   0x2   :  { %p602_p0 = scmp.ne.s32.totalorder %s1047_s0, %s601_s20  ;;  %p605_p1 = scmp.lt.u32.totalorder %s601_s20, %s1047_s0 }
   0x4   :  { %p607_p2 = pnand %p605_p1, %p602_p0 }
   0x6   :  { %610 = shalt.err (!%p607_p2)  }
   0x7   :  { %s767_s25 = smov [#allocation4]  }
   0x8   :  { %11 = dma.hbm_to_smem %s1047_s0, 16, %s767_s25, [#allocation3] }
   0x9   :  { %725 = dma.done.wait [#allocation3], 16 }
   0xa   :  { %726 = vsyncadd [#allocation3], 4294967280 }
   0xb   :  { %13 = sfence }
   0xc   :  { %14 = vsyncpa [#allocation6], 0 }
   0xd   :  { %16 = vsyncpa [#allocation6 + $0x1], 0 }
   0xe   :  { %17 = vsyncpa [#allocation9], 0 }
   0xf   :  { %18 = vsyncpa [#allocation7], 0 }
  0x10   :  { %20 = vsyncpa [#allocation7 + $0x1], 0  ;;  %s815_s28 = smov 0   ;;  %s817_s29 = smov 0  }
  0x11   :  { %s819_s30 = smov 0   ;;  %s821_s6 = smov 0  }
  0x12   :  { %s823_s7 = smov 0   ;;  %s825_s8 = smov 0  }
  0x13   :  { %s827_s0 = smov 0  }
  0x14 LB: > { %s849_s9 = sadd.s32 4294967295, %s765_s0   ;;  %s433_s10 = sadd.s32 4294967294, %s765_s0   ;;  %s765_s0 = sphi %s827_s0, %s1078_s0   ;;  %s761_s8 = sphi %s825_s8, %s1077_s8   ;;  %s757_s7 = sphi %s823_s7, %s1076_s7   ;;  %s753_s6 = sphi %s821_s6, %s1075_s6   ;;  %s749_s30 = sphi %s819_s30, %s1074_s30   ;;  %s745_s29 = sphi %s817_s29, %s1073_s29   ;;  %s741_s28 = sphi %s815_s28, %s1072_s28  }
  0x15   : > { %s853_s11 = sadd.s32 1, %s765_s0   ;;  %p48_p3 = scmp.ne.s32.totalorder %s757_s7, %s753_s6 }
  0x16   : > { %p1053_p4 = scmp.eq.s32.totalorder %s849_s9, 0  ;;  %s121_s12 = ssub.s32 %s765_s0, %s853_s11 }
  0x17   : > { %p122_p5 = scmp.eq.s32.totalorder %s121_s12, 0  ;;  %s124_s13 = sadd.s32 1, %s749_s30 }
  0x18   : > { %p862_p6 = por %p1053_p4, %p48_p3  ;;  %p134_p7 = scmp.ne.s32.totalorder %s749_s30, %s745_s29 }
  0x19   : > { %s869_s15 = scalar_select %p122_p5, %s749_s30, %s124_s13  }
  0x1a   : > { %s1057_s14 = scalar_select %p862_p6, 1, 0 }
  0x1b   : > { %1058 = sst [smem:[#allocation17_spill]] %s869_s15  ;;  %p135_p8 = scmp.eq.s32.totalorder %s849_s9, 7 }
  0x1c   : > { %p140_p9 = scmp.ne.s32.totalorder %s745_s29, %s741_s28  ;;  %p141_p10 = scmp.eq.s32.totalorder %s433_s10, 7 }
  0x1d   : > { %p434_p11 = scmp.ge.s32.totalorder %s765_s0, 1  ;;  %p875_p12 = por %p135_p8, %p134_p7 }
  0x1e   : > { %p148_p13 = scmp.lt.s32.totalorder %s765_s0, 9  ;;  %p880_p0 = por %p141_p10, %p140_p9 }
  0x1f   : > { %s1059_s16 = scalar_select %p875_p12, 1, 0 }
  0x20   : > { %s1060_s17 = scalar_select %p880_p0, 1, 0 }
  0x21   : > { %p885_p2 = pnand %p434_p11, %p148_p13  ;;  %s768_s19 = smov [#allocation8]  }
  0x22   : > { %s160_s20 = sshll.u32 %s768_s19, 4  ;;  %s30_s22 = sld [smem:[#allocation4 + %s765_s0]]  ;;  %s161_s20 = int_to_ptr.vmem [resolvable:$true] %s160_s20 }
  0x23   : > { %s1061_s18 = scalar_select %p885_p2, 1, 0 }
  0x24   : > { %p521_p3 = pneg %p885_p2  ;;  %s31_s23 = sld [smem:[#allocation4 + %s853_s11]] }
  0x25   : > { %s611_s26 = scalar_lea.hbm %s1049_s2, 4096 }
  0x26   : > { %p893_p5 = pnand %p521_p3, %p1053_p4  ;;  %p612_p7 = scmp.ne.s32.totalorder %s1049_s2, %s611_s26 }
  0x27   : > { %p618_p11 = scmp.lt.u32.totalorder %s611_s26, %s1049_s2 }
  0x28   : > { %p613_p8 = pneg %p893_p5 }
  0x2a   : > { %p614_p9 = pnand %p613_p8, %p612_p7 }
  0x2c   : > { %p615_p10 = pneg %p614_p9 }
  0x2e   : > { %p620_p13 = pnand %p618_p11, %p615_p10 }
  0x30   : > { %623 = shalt.err (!%p620_p13)
}
  0x31   : > { %s624_s13 = scalar_lea.vmem %s161_s20, 4096  ;;  %p632_p0 = scmp.lt.s32.totalorder %s161_s20, %s161_s20 }
  0x32   : > { %p625_p3 = scmp.ne.s32.totalorder %s161_s20, %s624_s13  ;;  %p633_p12 = scmp.lt.s32.totalorder %s624_s13, %s624_s13 }
  0x34   : > { %p627_p1 = pnand %p625_p3, %p613_p8  ;;  %p634_p6 = por %p633_p12, %p632_p0 }
  0x36   : > { %p628_p4 = pneg %p627_p1 }
  0x38   : > { %p635_p2 = pnand %p634_p6, %p628_p4 }
  0x3a   : > { %638 = shalt.err (!%p635_p2)
}
  0x3b   : > { %s769_s19 = smov 128   ;;  %s770_s24 = smov 8  }
  0x3c   : > { %524 = dma.hbm_to_vmem [thread:$0]  (!%p893_p5), %s1049_s2, 4096, %s161_s20, [#allocation9], %s769_s19, %s769_s19, %s770_s24  }
  0x3d   : > { %p42_p1 = scmp.ne.s32.totalorder %s761_s8, %s757_s7  ;;  %p43_p12 = scmp.eq.s32.totalorder %s765_s0, 0 }
  0x3e   : > { %s35_s27 = sadd.s32 1, %s761_s8  ;;  %s32_s6 = ssub.s32 %s30_s22, %s31_s23 }
  0x3f   : > { %p44_p4 = por %p43_p12, %p42_p1  ;;  %p536_p6 = scmp.lt.s32.totalorder %s765_s0, 8 }
  0x40   : > { %p33_p0 = scmp.eq.s32.totalorder %s32_s6, 0  ;;  %s180_s10 = sand.u32 1, %s761_s8  }
  0x41   : > { %s513_s12 = scalar_select %p44_p4, [#allocation4], [#allocation11] }
  0x42   : > { %s922_s13 = scalar_select %p33_p0, %s761_s8, %s35_s27  }
  0x43   : > { %s514_s15 = scalar_select %p44_p4, %s765_s0, 0 }
  0x44   : > { %s1080_s12 = smov (!%p536_p6, %s513_s12), [#allocation12]  ;;  %p925_p2 = pnand %p536_p6, %p44_p4 }
  0x45   : > { %s1082_s15 = smov (!%p536_p6, %s514_s15), 0  ;;  %s183_s19 = scalar_lea.vmem [#allocation5], %s180_s10 }
  0x46   : > { %s184_s20 = sld [smem:[%s1080_s12 + %s1082_s15]]  ;;  %s191_s24 = sshll.u32 %s183_s19, 4  ;;  %s929_s24 = int_to_ptr.vmem [resolvable:$true] %s191_s24 }
  0x47   : > { %s181_s27 = scalar_lea.sflag [#allocation6], %s180_s10  ;;  %p641_p7 = pneg %p925_p2 }
  0x4c   : > { %s437_s22 = sshll.u32 %s184_s20, 4  ;;  %s644_s20 = scalar_lea.hbm %s1048_s1, 256 }
  0x4d   : > { %s934_s26 = scalar_lea.hbm %s1048_s1, %s437_s22 }
  0x4e   : > { %s639_s6 = scalar_lea.hbm %s934_s26, 16  ;;  %p645_p10 = scmp.lt.u32.totalorder %s934_s26, %s1048_s1 }
  0x4f   : > { %p640_p5 = scmp.ne.s32.totalorder %s934_s26, %s639_s6  ;;  %p646_p11 = scmp.lt.u32.totalorder %s644_s20, %s639_s6 }
  0x50   : > { %p648_p3 = scmp.lt.u32.totalorder %s639_s6, %s934_s26 }
  0x51   : > { %p642_p8 = pnand %p641_p7, %p640_p5  ;;  %p647_p13 = por %p646_p11, %p645_p10 }
  0x53   : > { %p643_p9 = pneg %p642_p8  ;;  %p649_p1 = por %p648_p3, %p647_p13 }
  0x55   : > { %p650_p12 = pnand %p649_p1, %p643_p9 }
  0x57   : > { %653 = shalt.err (!%p650_p12)
}
  0x58   : > { %s654_s10 = scalar_lea.vmem %s929_s24, 16  ;;  %s771_s23 = smov [#allocation5]  }
  0x59   : > { %p655_p4 = scmp.ne.s32.totalorder %s929_s24, %s654_s10  ;;  %s659_s25 = sshll.u32 %s771_s23, 4  ;;  %s660_s25 = int_to_ptr.vmem [resolvable:$false] %s659_s25 }
  0x5a   : > { %s661_s15 = scalar_lea.vmem %s660_s25, 32  ;;  %p662_p5 = scmp.lt.s32.totalorder %s929_s24, %s660_s25 }
  0x5b   : > { %p657_p6 = pnand %p655_p4, %p641_p7  ;;  %p663_p8 = scmp.lt.s32.totalorder %s661_s15, %s654_s10 }
  0x5d   : > { %p658_p0 = pneg %p657_p6  ;;  %p664_p10 = por %p663_p8, %p662_p5 }
  0x5f   : > { %p665_p11 = pnand %p664_p10, %p658_p0 }
  0x61   : > { %668 = shalt.err (!%p665_p11)
}
  0x62   : > { %530 = dma.hbm_to_vmem [thread:$0]  (!%p925_p2), %s934_s26, 16, %s929_s24, %s181_s27  }
  0x63   : > { %p1064_p9 = scmp.ne.s32.totalorder %s1061_s18, 0 }
  0x64   : > { %s202_s6 = sand.u32 (!%p1064_p9), 1, %s757_s7   ;;  %p1065_p7 = scmp.ne.s32.totalorder (!%p1064_p9), %s1057_s14, 0 }
  0x65   : > { %200 = sbr.rel (%p1064_p9) target bundleno = 398 (0x18e), region = 36  ;;  %s203_s12 = scalar_lea.sflag (!%p1064_p9), [#allocation6], %s202_s6 }
  0x66   : > { %s964_s20 = scalar_lea.vmem (!%p1064_p9), [#allocation5], %s202_s6 }
  0x6c   : > { %728 = dma.done.wait (%p1065_p7), %s203_s12, 16  }
  0x6d   : > { %730 = vsyncadd (%p1065_p7), %s203_s12, 4294967280  ;;  %p1066_p13 = scmp.eq.s32.totalorder %s849_s9, 0 }
  0x6f   : > { %732 = dma.done.wait (%p1066_p13), [#allocation9], 4096   ;;  %p1067_p3 = pmov %p1066_p13 }
  0x70   : > { %s230_s18 = sand.u32 1, %s745_s29   ;;  %p1068_p2 = scmp.ne.s32.totalorder %s849_s9, 0 }
  0x71   : > { %734 = vsyncadd (%p1067_p3), [#allocation9], 4294963200  ;;  %s977_s21 = scalar_lea.vmem [#allocation10], %s230_s18  ;;  %v237_v0 = vld [vmem:[%s1051_s4] sm:$0x1] (!%p1068_p2) }
  0x72   : > { %236 = sbr.rel (%p1068_p2) target bundleno = 121 (0x79), region = 48  ;;  %238 = vst [vmem:[#allocation2] sm:$0x1] (!%p1068_p2), %v237_v0 }
  0x79 PF: > { %v257_v1 = vld [vmem:[#allocation8 + $0x80] sm:$0xff]  ;;  %v258_v2 = vld [vmem:[#allocation8 + $0x88] sm:$0xff]  ;;  %v259_v6 = vld [vmem:[#allocation8 + $0x90] sm:$0xff]  ;;  %s441_s19 = sshll.u32 %s849_s9, 4  ;;  %s360_s22 = sshll.u32 %s977_s21, 4  ;;  %s995_s22 = int_to_ptr.vmem [resolvable:$true] %s360_s22 }
  0x7a   : > { %v241_v3 = vld [vmem:[#allocation8] sm:$0xff]  ;;  %v479_v4 = vpack.c.bf16 %v258_v2, %v257_v1  ;;  %v242_v5 = vld [vmem:[#allocation8 + $0x8] sm:$0xff]  ;;  %v260_v7 = vld [vmem:[#allocation8 + $0x98] sm:$0xff]  ;;  %s993_s25 = scalar_lea.hbm %s1052_s5, %s441_s19  ;;  %s348_s15 = scalar_lea.sflag [#allocation7], %s230_s18 }
  0x7b   : > { %v481_v8 = vpack.c.bf16 %v242_v5, %v241_v3  ;;  %v483_v9 = vpack.c.bf16 %v260_v7, %v259_v6  ;;  %v243_v10 = vld [vmem:[#allocation8 + $0x10] sm:$0xff]  ;;  %v244_v11 = vld [vmem:[#allocation8 + $0x18] sm:$0xff]  ;;  %v261_v12 = vld [vmem:[#allocation8 + $0xa0] sm:$0xff]  ;;  %s669_s6 = scalar_lea.vmem %s995_s22, 16  ;;  %p1069_p12 = scmp.ne.s32.totalorder %s1059_s16, 0 }
  0x7c   : > { %480 = vmatprep.subr.bf16.mxu0 %v479_v4  ;;  %v262_v13 = vld [vmem:[#allocation8 + $0xa8] sm:$0xff]  ;;  %v485_v14 = vpack.c.bf16 %v244_v11, %v243_v10  ;;  %v245_v16 = vld [vmem:[#allocation8 + $0x20] sm:$0xff]  ;;  %v263_v18 = vld [vmem:[#allocation8 + $0xb0] sm:$0xff]  ;;  %p670_p1 = scmp.ne.s32.totalorder %s995_s22, %s669_s6  ;;  %s772_s9 = smov [#allocation10]  }
  0x7d   : > { %482 = vmatpush3.bf16.msra.mxu0 %v481_v8  ;;  %v487_v15 = vpack.c.bf16 %v262_v13, %v261_v12  ;;  %v246_v17 = vld [vmem:[#allocation8 + $0x28] sm:$0xff]  ;;  %v264_v19 = vld [vmem:[#allocation8 + $0xb8] sm:$0xff]  ;;  %v247_v22 = vld [vmem:[#allocation8 + $0x30] sm:$0xff]  ;;  %s673_s12 = sshll.u32 %s772_s9, 4  ;;  %s674_s12 = int_to_ptr.vmem [resolvable:$false] %s673_s12 }
  0x7e   : > { %484 = vmatprep.subr.bf16.mxu0 %v483_v9  ;;  %v489_v20 = vpack.c.bf16 %v246_v17, %v245_v16  ;;  %v491_v21 = vpack.c.bf16 %v264_v19, %v263_v18  ;;  %v248_v23 = vld [vmem:[#allocation8 + $0x38] sm:$0xff]  ;;  %v265_v24 = vld [vmem:[#allocation8 + $0xc0] sm:$0xff]  ;;  %v266_v25 = vld [vmem:[#allocation8 + $0xc8] sm:$0xff]  ;;  %p671_p4 = pnand %p670_p1, %p1069_p12  ;;  %p676_p0 = scmp.lt.s32.totalorder %s995_s22, %s674_s12 }
  0x7f   : > { %v240_v26 = vld [vmem:[#allocation2] sm:$0x1]  ;;  %v493_v27 = vpack.c.bf16 %v248_v23, %v247_v22  ;;  %v495_v28 = vpack.c.bf16 %v266_v25, %v265_v24  ;;  %v249_v29 = vld [vmem:[#allocation8 + $0x40] sm:$0xff]  ;;  %v250_v30 = vld [vmem:[#allocation8 + $0x48] sm:$0xff] }
  0x80   : > { %338 = vmatprep.mubr.f32.mxu0 %v240_v26  ;;  %v267_v31 = vld [vmem:[#allocation8 + $0xd0] sm:$0xff]  ;;  %v268_v32 = vld [vmem:[#allocation8 + $0xd8] sm:$0xff]  ;;  %v497_v33 = vpack.c.bf16 %v250_v30, %v249_v29  ;;  %v269_v37 = vld [vmem:[#allocation8 + $0xe0] sm:$0xff]  ;;  %p672_p6 = pneg %p671_p4 }
  0x81   : > { %486 = vmatpush3.bf16.msra.mxu0 %v485_v14  ;;  %v499_v34 = vpack.c.bf16 %v268_v32, %v267_v31  ;;  %v251_v35 = vld [vmem:[#allocation8 + $0x50] sm:$0xff]  ;;  %v252_v36 = vld [vmem:[#allocation8 + $0x58] sm:$0xff]  ;;  %v270_v38 = vld [vmem:[#allocation8 + $0xe8] sm:$0xff] }
  0x82   : > { %488 = vmatprep.subr.bf16.mxu0 %v487_v15  ;;  %v501_v39 = vpack.c.bf16 %v252_v36, %v251_v35  ;;  %v503_v40 = vpack.c.bf16 %v270_v38, %v269_v37  ;;  %v253_v41 = vld [vmem:[#allocation8 + $0x60] sm:$0xff]  ;;  %v254_v42 = vld [vmem:[#allocation8 + $0x68] sm:$0xff]  ;;  %v271_v43 = vld [vmem:[#allocation8 + $0xf0] sm:$0xff] }
  0x83   : > { %v272_v44 = vld [vmem:[#allocation8 + $0xf8] sm:$0xff]  ;;  %v505_v45 = vpack.c.bf16 %v254_v42, %v253_v41  ;;  %v255_v47 = vld [vmem:[#allocation8 + $0x70] sm:$0xff] }
  0x84   : > { %v507_v46 = vpack.c.bf16 %v272_v44, %v271_v43  ;;  %v256_v48 = vld [vmem:[#allocation8 + $0x78] sm:$0xff] }
  0x85   : > { %490 = vmatpush3.bf16.msra.mxu0 %v489_v20  ;;  %v509_v49 = vpack.c.bf16 %v256_v48, %v255_v47  ;;  %v239_v50 = vld [vmem:[%s964_s20] sm:$0x1]  ;;  %s675_s20 = scalar_lea.vmem %s674_s12, 32 }
  0x86   : > { %492 = vmatprep.subr.bf16.mxu0 %v491_v21  ;;  %v273_v52 = vld [vmem:[%s1050_s3] sm:$0x1]  ;;  %p677_p5 = scmp.lt.s32.totalorder %s675_s20, %s669_s6 }
  0x88   : > { %p678_p8 = por %p677_p5, %p676_p0 }
  0x89   : > { %494 = vmatpush3.bf16.msra.mxu0 %v493_v27 }
  0x8a   : > { %496 = vmatprep.subr.bf16.mxu0 %v495_v28  ;;  %p679_p10 = pnand %p678_p8, %p672_p6 }
  0x8d   : > { %498 = vmatpush3.bf16.msra.mxu0 %v497_v33 }
  0x8e   : > { %500 = vmatprep.subr.bf16.mxu0 %v499_v34 }
  0x91   : > { %502 = vmatpush3.bf16.msra.mxu0 %v501_v39 }
  0x92   : > { %504 = vmatprep.subr.bf16.mxu0 %v503_v40 }
  0x95   : > { %506 = vmatpush3.bf16.msra.mxu0 %v505_v45 }
  0x96   : > { %508 = vmatprep.subr.bf16.mxu0 %v507_v46 }
  0x99   : > { %510 = vmatpush3.bf16.msra.mxu0 %v509_v49 }
  0x9c   : > { %339 = vmatmul.mubr.f32.vlgmr.msra.gmra.mrb[0].mxu0 %v239_v50 }
 0x16f   : > { %v476_v51 = vpop.f32.mrb[0].mxu0 }
 0x170   : > { %v477_v53 = vpop.f32.mrb[1].mxu0 }
 0x171   : > { %v478_v54 = vadd.f32 %v477_v53, %v476_v51 }
 0x173   : > { %v341_v55 = vadd.f32 %v478_v54, %v273_v52 }
 0x175   : > { %599 = vtanh.f32 %v341_v55 }
 0x17f   : > { %v600_v56 = vpop.eup %599 }
 0x180   : > { %345 = vst [vmem:[#allocation2] sm:$0x1] %v600_v56  ;;  %346 = vst [vmem:[%s977_s21] sm:$0x1] %v600_v56 }
 0x181   : > { %682 = shalt.err (!%p679_p10)
}
 0x182   : > { %s683_s18 = scalar_lea.hbm %s993_s25, 16  ;;  %s687_s26 = scalar_lea.hbm %s1052_s5, 128 }
 0x183   : > { %p684_p11 = scmp.ne.s32.totalorder %s993_s25, %s683_s18  ;;  %p688_p13 = scmp.lt.u32.totalorder %s993_s25, %s1052_s5 }
 0x184   : > { %p689_p3 = scmp.lt.u32.totalorder %s687_s26, %s683_s18  ;;  %p691_p1 = scmp.lt.u32.totalorder %s683_s18, %s993_s25 }
 0x185   : > { %p685_p9 = pnand %p684_p11, %p1069_p12 }
 0x186   : > { %p690_p2 = por %p689_p3, %p688_p13 }
 0x187   : > { %p686_p7 = pneg %p685_p9 }
 0x188   : > { %p692_p4 = por %p691_p1, %p690_p2 }
 0x18a   : > { %p693_p6 = pnand %p692_p4, %p686_p7 }
 0x18c   : > { %696 = shalt.err (!%p693_p6)
}
 0x18d   : > { %519 = dma.vmem_to_hbm [thread:$0]  (%p1069_p12), %s995_s22, 16, %s993_s25, %s348_s15  }
 0x18e PF: > { %p538_p0 = scmp.ge.s32.totalorder %s765_s0, 2  ;;  %s372_s19 = sand.u32 1, %s741_s28  }
 0x18f   : > { %p1070_p5 = scmp.ne.s32.totalorder %s1060_s17, 0  ;;  %s373_s10 = scalar_lea.sflag [#allocation7], %s372_s19 }
 0x191   : > { %p532_p8 = pnand %p538_p0, %p1070_p5 }
 0x193   : > { %736 = dma.done.wait (!%p532_p8), %s373_s10, 16  }
 0x194   : > { %738 = vsyncadd (!%p532_p8), %s373_s10, 4294967280  ;;  %s1071_s23 = sld [smem:[#allocation17_spill]]  ;;  %p23_p12 = scmp.ge.s32.totalorder %s853_s11, 10  }
 0x195   : > { %s1072_s28 = smov %s745_s29  ;;  %s1073_s29 = smov %s749_s30 }
 0x196   : > { %s1075_s6 = smov %s757_s7  ;;  %s1076_s7 = smov %s761_s8 }
 0x197   : > { %s1077_s8 = smov %s922_s13  ;;  %s1078_s0 = smov %s853_s11 }
 0x198   :  { %25 = sbr.rel (!%p23_p12) target bundleno = 20 (0x14), region = 89 }
 0x19a   : > { %s1074_s30 = smov %s1071_s23 }
 0x19f   :  { %377 = vsyncpa [#allocation6], 1 }
 0x1a0   :  { %379 = vsyncpa [#allocation6 + $0x1], 1 }
 0x1a1   :  { %380 = vsyncpa [#allocation9], 1 }
 0x1a2   :  { %381 = vsyncpa [#allocation7], 1 }
 0x1a3   :  { %383 = vsyncpa [#allocation7 + $0x1], 1 }

</bundles_post_ra>
